<compile_context>
chip_gen: v7x
topology: tpu7x:2x2x1
jax: 0.10.0
libtpu: 0.0.40
codegen_flags: <defaults>
</compile_context>

<pallas_src>
import jax
import jax.numpy as jnp
from jax.experimental import pallas as pl
from jax.experimental.pallas import tpu as pltpu

EPS = 1e-6


def _round_up(n, m):
    return ((n + m - 1) // m) * m


def _layernorm_kernel(x_ref, gamma_ref, beta_ref, o_ref):
    # x_ref: (TR, C) tile; gamma_ref/beta_ref: (1, C) f32, grid-invariant.
    x = x_ref[...].astype(jnp.float32)
    inv_c = jnp.float32(1.0 / x.shape[-1])

    # Two-pass statistics (numerically matches the PyTorch/reference formula;
    # the serialized second reduction is hidden behind the HBM DMA since this
    # kernel is memory-bound).
    mean = jnp.sum(x, axis=-1, keepdims=True) * inv_c
    xc = x - mean
    var = jnp.sum(xc * xc, axis=-1, keepdims=True) * inv_c

    inv = jax.lax.rsqrt(var + EPS)          # EUP slot, effectively free
    y = xc * inv
    o_ref[...] = (y * gamma_ref[...] + beta_ref[...]).astype(o_ref.dtype)


def layernorm_pallas(x, gamma, beta, *, tr=1024):
    """LayerNorm over the last axis of x (any leading dims), eps=1e-6, affine.

    Output dtype == input dtype (pass bf16 to halve HBM traffic; math is f32).
    """
    orig_shape = x.shape
    c = orig_shape[-1]
    x2 = x.reshape(-1, c)                    # (R, C)
    r = x2.shape[0]

    # gamma/beta: reshape + cast to f32 once here (not per grid step).
    gamma2 = gamma.reshape(1, c).astype(jnp.float32)
    beta2 = beta.reshape(1, c).astype(jnp.float32)

    # Clamp the row tile to the actual row count (multiple of 8).  Partial
    # tail tiles: Pallas pads OOB reads and clips OOB writes; rows are
    # independent, so padded garbage never leaks into valid rows.
    tr_eff = max(8, min(tr, _round_up(r, 8)))
    grid = (pl.cdiv(r, tr_eff),)

    out = pl.pallas_call(
        _layernorm_kernel,
        out_shape=jax.ShapeDtypeStruct((r, c), x.dtype),
        grid=grid,
        in_specs=[
            pl.BlockSpec((tr_eff, c), lambda i: (i, 0)),
            pl.BlockSpec((1, c), lambda i: (0, 0)),   # gamma stays resident
            pl.BlockSpec((1, c), lambda i: (0, 0)),   # beta stays resident
        ],
        out_specs=pl.BlockSpec((tr_eff, c), lambda i: (i, 0)),
        compiler_params=pltpu.CompilerParams(
            dimension_semantics=("parallel",)),
    )(x2, gamma2, beta2)
    return out.reshape(orig_shape)


def reference_layernorm(x, gamma, beta):
    xf = x.astype(jnp.float32)
    mean = jnp.mean(xf, axis=-1, keepdims=True)
    var = jnp.mean((xf - mean) ** 2, axis=-1, keepdims=True)
    y = (xf - mean) * jax.lax.rsqrt(var + EPS)
    return (y * gamma + beta).astype(x.dtype)


if __name__ == "__main__":
    key = jax.random.PRNGKey(0)
    kx, kg, kb = jax.random.split(key, 3)

    # Input matching the module: x329 ~ [1, 14, 14, 384]
    x = jax.random.normal(kx, (1, 14, 14, 384), dtype=jnp.float32)

    # LayerNorm((384,)) affine params (PyTorch default is ones/zeros; use
    # deterministic random values to exercise the affine path).
    gamma = 1.0 + 0.1 * jax.random.normal(kg, (384,), dtype=jnp.float32)
    beta = 0.1 * jax.random.normal(kb, (384,), dtype=jnp.float32)

    out = layernorm_pallas(x, gamma, beta)
    jax.block_until_ready(out)

    ref = reference_layernorm(x, gamma, beta)
    assert out.shape == (1, 14, 14, 384)
    assert jnp.allclose(out, ref, atol=2e-5, rtol=2e-5), "mismatch vs reference"

    print("KERNEL_OK")
</pallas_src>

<mosaic_0001>
module attributes {stable_mosaic.version = 11 : i64} {
  func.func @_layernorm_kernel(%arg0: i32, %arg1: memref<200x384xf32, #tpu.memory_space<vmem>>, %arg2: memref<1x384xf32, #tpu.memory_space<vmem>>, %arg3: memref<1x384xf32, #tpu.memory_space<vmem>>, %arg4: memref<200x384xf32, #tpu.memory_space<vmem>>) attributes {dimension_semantics = [#tpu.dimension_semantics<parallel>], iteration_bounds = array<i64: 1>, scalar_prefetch = 0 : i64, scratch_operands = 0 : i64, tpu.core_type = #tpu.core_type<tc>, window_params = [{transform_indices = @transform_0, window_bounds = array<i64: 200, 384>}, {pipeline_mode = #tpu.pipeline_mode<synchronous>, transform_indices = @transform_1, window_bounds = array<i64: 1, 384>}, {pipeline_mode = #tpu.pipeline_mode<synchronous>, transform_indices = @transform_2, window_bounds = array<i64: 1, 384>}, {transform_indices = @transform_3, window_bounds = array<i64: 200, 384>}]} {
    %c0 = arith.constant 0 : index
    %c0_0 = arith.constant 0 : index
    %0 = vector.load %arg1[%c0, %c0_0] : memref<200x384xf32, #tpu.memory_space<vmem>>, vector<200x384xf32>
    %cst = arith.constant dense<0.000000e+00> : vector<200xf32>
    %1 = vector.multi_reduction <add>, %0, %cst [1] : vector<200x384xf32> to vector<200xf32>
    %2 = vector.shape_cast %1 : vector<200xf32> to vector<200x1xf32>
    %cst_1 = arith.constant 0.00260416674 : f32
    %3 = vector.broadcast %cst_1 : f32 to vector<200x1xf32>
    %4 = arith.mulf %2, %3 : vector<200x1xf32>
    %5 = vector.broadcast %4 : vector<200x1xf32> to vector<200x384xf32>
    %6 = arith.subf %0, %5 : vector<200x384xf32>
    %7 = arith.mulf %6, %6 : vector<200x384xf32>
    %cst_2 = arith.constant dense<0.000000e+00> : vector<200xf32>
    %8 = vector.multi_reduction <add>, %7, %cst_2 [1] : vector<200x384xf32> to vector<200xf32>
    %9 = vector.shape_cast %8 : vector<200xf32> to vector<200x1xf32>
    %cst_3 = arith.constant 0.00260416674 : f32
    %10 = vector.broadcast %cst_3 : f32 to vector<200x1xf32>
    %11 = arith.mulf %9, %10 : vector<200x1xf32>
    %cst_4 = arith.constant 9.99999997E-7 : f32
    %12 = vector.broadcast %cst_4 : f32 to vector<200x1xf32>
    %13 = arith.addf %11, %12 : vector<200x1xf32>
    %14 = math.rsqrt %13 : vector<200x1xf32>
    %15 = vector.broadcast %14 : vector<200x1xf32> to vector<200x384xf32>
    %16 = arith.mulf %6, %15 : vector<200x384xf32>
    %c0_5 = arith.constant 0 : index
    %c0_6 = arith.constant 0 : index
    %17 = vector.load %arg2[%c0_5, %c0_6] : memref<1x384xf32, #tpu.memory_space<vmem>>, vector<1x384xf32>
    %18 = vector.broadcast %17 : vector<1x384xf32> to vector<200x384xf32>
    %19 = arith.mulf %16, %18 : vector<200x384xf32>
    %c0_7 = arith.constant 0 : index
    %c0_8 = arith.constant 0 : index
    %20 = vector.load %arg3[%c0_7, %c0_8] : memref<1x384xf32, #tpu.memory_space<vmem>>, vector<1x384xf32>
    %21 = vector.broadcast %20 : vector<1x384xf32> to vector<200x384xf32>
    %22 = arith.addf %19, %21 : vector<200x384xf32>
    %c0_9 = arith.constant 0 : index
    %c0_10 = arith.constant 0 : index
    %23 = vector.load %arg4[%c0_9, %c0_10] : memref<200x384xf32, #tpu.memory_space<vmem>>, vector<200x384xf32>
    tpu.vector_store %arg4[%c0_9, %c0_10], %22 {strides = array<i32>} : memref<200x384xf32, #tpu.memory_space<vmem>>, vector<200x384xf32>,
    return
  }
  func.func @transform_0(%arg0: i32) -> (i32, i32) {
    %c0_i32 = arith.constant 0 : i32
    %c0_i32_0 = arith.constant 0 : i32
    return %arg0, %c0_i32 : i32, i32
  }
  func.func @transform_1(%arg0: i32) -> (i32, i32) {
    %c0_i32 = arith.constant 0 : i32
    %c0_i32_0 = arith.constant 0 : i32
    %c0_i32_1 = arith.constant 0 : i32
    return %c0_i32, %c0_i32_0 : i32, i32
  }
  func.func @transform_2(%arg0: i32) -> (i32, i32) {
    %c0_i32 = arith.constant 0 : i32
    %c0_i32_0 = arith.constant 0 : i32
    %c0_i32_1 = arith.constant 0 : i32
    return %c0_i32, %c0_i32_0 : i32, i32
  }
  func.func @transform_3(%arg0: i32) -> (i32, i32) {
    %c0_i32 = arith.constant 0 : i32
    %c0_i32_0 = arith.constant 0 : i32
    return %arg0, %c0_i32 : i32, i32
  }
}

</mosaic_0001>

<bundles_post_ra>
// kernel: tpu_custom_call.1
= control target key start
LH: loop header
LB: loop body
LE: loop exit
PB: predicated region body
PF: predicated region fallthrough
CT: control target
= control target key end

     0   :  { %8 = vsyncpa [#allocation3], 0  ;;  %s1916_s0 = inlined_call_operand.hbm [shape: f32[196,384], index: 0, kind: input, shape index: {}]   ;;  %s1917_s1 = inlined_call_operand.vmem [shape: f32[1,384], index: 1, kind: input, shape index: {}]   ;;  %s1918_s2 = inlined_call_operand.vmem [shape: f32[1,384], index: 2, kind: input, shape index: {}]   ;;  %s1919_s3 = inlined_call_operand.hbm [shape: f32[196,384], index: 3, kind: output, shape index: {}]  }
   0x1   :  { %9 = vsyncpa [#allocation4], 0  ;;  %s1007_s12 = smov [#allocation2]   ;;  %s959_s16 = scalar_lea.hbm %s1916_s0, 9600 }
   0x2   :  { %s15_s13 = sshll.u32 %s1007_s12, 4  ;;  %p960_p0 = scmp.ne.s32.totalorder %s1916_s0, %s959_s16  ;;  %s16_s13 = int_to_ptr.vmem [resolvable:$true] %s15_s13 }
   0x3   :  { %p963_p1 = scmp.lt.u32.totalorder %s959_s16, %s1916_s0 }
   0x5   :  { %p965_p2 = pnand %p963_p1, %p960_p0 }
   0x7   :  { %968 = shalt.err (!%p965_p2)
}
   0x8   :  { %s969_s21 = scalar_lea.vmem %s16_s13, 9600  ;;  %p974_p4 = scmp.lt.s32.totalorder %s16_s13, %s16_s13 }
   0x9   :  { %p970_p3 = scmp.ne.s32.totalorder %s16_s13, %s969_s21  ;;  %p975_p5 = scmp.lt.s32.totalorder %s969_s21, %s969_s21 }
   0xb   :  { %p976_p6 = por %p975_p5, %p974_p4 }
   0xd   :  { %p977_p7 = pnand %p976_p6, %p970_p3 }
   0xf   :  { %980 = shalt.err (!%p977_p7)
}
  0x10   :  { %s1008_s22 = smov 384   ;;  %s1009_s23 = smov 24  }
  0x11   :  { %21 = dma.hbm_to_vmem [thread:$0]  %s1916_s0, 9600, %s16_s13, [#allocation3], %s1008_s22, %s1008_s22, %s1009_s23  }
  0x12   :  { %1003 = dma.done.wait [#allocation3], 9600  }
  0x13   :  { %1004 = vsyncadd [#allocation3], 4294957696  ;;  %v1046_v0 = vld [vmem:[#allocation2] sm:$0xff]  ;;  %v1048_v1 = vld [vmem:[#allocation2 + $0x8] sm:$0xff] }
  0x14   :  { %v1050_v2 = vld [vmem:[#allocation2 + $0x10] sm:$0xff]  ;;  %v104_v3 = vadd.f32 %v1048_v1, %v1046_v0  ;;  %v1056_v5 = vld [vmem:[#allocation2 + $0x38] sm:$0xff]  ;;  %v1058_v6 = vld [vmem:[#allocation2 + $0x40] sm:$0xff] }
  0x15   :  { %v1054_v4 = vld [vmem:[#allocation2 + $0x30] sm:$0xff]  ;;  %v1062_v8 = vld [vmem:[#allocation2 + $0x18] sm:$0xff]  ;;  %v1064_v9 = vld [vmem:[#allocation2 + $0x20] sm:$0xff] }
  0x16   :  { %v112_v7 = vadd.f32 %v1056_v5, %v1054_v4  ;;  %v1066_v10 = vld [vmem:[#allocation2 + $0x28] sm:$0xff]  ;;  %v105_v11 = vadd.f32 %v104_v3, %v1050_v2  ;;  %v108_v12 = vadd.f32 %v1064_v9, %v1062_v8  ;;  %v1073_v14 = vld [vmem:[#allocation2 + $0x50] sm:$0xff]  ;;  %v1075_v15 = vld [vmem:[#allocation2 + $0x58] sm:$0xff] }
  0x17   :  { %v1071_v13 = vld [vmem:[#allocation2 + $0x48] sm:$0xff]  ;;  %v1080_v18 = vld [vmem:[#allocation2 + $0x60] sm:$0xff]  ;;  %v1087_v22 = vld [vmem:[#allocation2 + $0x78] sm:$0xff] }
  0x18   :  { %v113_v16 = vadd.f32 %v112_v7, %v1058_v6  ;;  %v116_v17 = vadd.f32 %v1073_v14, %v1071_v13  ;;  %v1082_v19 = vld [vmem:[#allocation2 + $0x68] sm:$0xff]  ;;  %106 = vadd.xlane.f32.xlu0 %v105_v11  ;;  %v109_v20 = vadd.f32 %v108_v12, %v1066_v10  ;;  %v1089_v23 = vld [vmem:[#allocation2 + $0x80] sm:$0xff]  ;;  %v1092_v25 = vld [vmem:[#allocation2 + $0x70] sm:$0xff] }
  0x19   :  { %v120_v21 = vadd.f32 %v1082_v19, %v1080_v18  ;;  %v124_v26 = vadd.f32 %v1089_v23, %v1087_v22  ;;  %v1096_v27 = vld [vmem:[#allocation2 + $0x90] sm:$0xff]  ;;  %v1098_v28 = vld [vmem:[#allocation2 + $0x98] sm:$0xff]  ;;  %v1100_v29 = vld [vmem:[#allocation2 + $0x88] sm:$0xff] }
  0x1a   :  { %114 = vadd.xlane.f32.xlu1 %v113_v16  ;;  %v117_v24 = vadd.f32 %v116_v17, %v1075_v15  ;;  %v1102_v30 = vld [vmem:[#allocation2 + $0xa8] sm:$0xff]  ;;  %v1104_v31 = vld [vmem:[#allocation2 + $0xb0] sm:$0xff]  ;;  %v128_v33 = vadd.f32 %v1098_v28, %v1096_v27  ;;  %v1110_v35 = vld [vmem:[#allocation2 + $0xa0] sm:$0xff] }
  0x1b   :  { %v121_v32 = vadd.f32 %v120_v21, %v1092_v25  ;;  %v125_v34 = vadd.f32 %v124_v26, %v1100_v29  ;;  %v132_v36 = vadd.f32 %v1104_v31, %v1102_v30  ;;  %v1114_v37 = vld [vmem:[#allocation2 + $0xc0] sm:$0xff]  ;;  %v1116_v38 = vld [vmem:[#allocation2 + $0xc8] sm:$0xff]  ;;  %v1118_v39 = vld [vmem:[#allocation2 + $0xb8] sm:$0xff] }
  0x1c   :  { %110 = vadd.xlane.f32.xlu0 %v109_v20  ;;  %v1120_v40 = vld [vmem:[#allocation2 + $0xd8] sm:$0xff]  ;;  %v1122_v41 = vld [vmem:[#allocation2 + $0xe0] sm:$0xff]  ;;  %v129_v42 = vadd.f32 %v128_v33, %v1110_v35  ;;  %v136_v43 = vadd.f32 %v1116_v38, %v1114_v37  ;;  %v1128_v45 = vld [vmem:[#allocation2 + $0xd0] sm:$0xff] }
  0x1d   :  { %v133_v44 = vadd.f32 %v132_v36, %v1118_v39  ;;  %v140_v46 = vadd.f32 %v1122_v41, %v1120_v40  ;;  %v1132_v47 = vld [vmem:[#allocation2 + $0xf0] sm:$0xff]  ;;  %v1134_v48 = vld [vmem:[#allocation2 + $0xf8] sm:$0xff]  ;;  %v1136_v49 = vld [vmem:[#allocation2 + $0xe8] sm:$0xff] }
  0x1e   :  { %118 = vadd.xlane.f32.xlu1 %v117_v24  ;;  %v1138_v50 = vld [vmem:[#allocation2 + $0x108] sm:$0xff]  ;;  %v1140_v51 = vld [vmem:[#allocation2 + $0x110] sm:$0xff]  ;;  %v137_v52 = vadd.f32 %v136_v43, %v1128_v45  ;;  %v144_v53 = vadd.f32 %v1134_v48, %v1132_v47  ;;  %v1146_v55 = vld [vmem:[#allocation2 + $0x100] sm:$0xff] }
  0x1f   :  { %v141_v54 = vadd.f32 %v140_v46, %v1136_v49  ;;  %v148_v56 = vadd.f32 %v1140_v51, %v1138_v50  ;;  %v1150_v57 = vld [vmem:[#allocation2 + $0x120] sm:$0xff]  ;;  %v1152_v58 = vld [vmem:[#allocation2 + $0x128] sm:$0xff]  ;;  %v1154_v59 = vld [vmem:[#allocation2 + $0x118] sm:$0xff] }
  0x20   :  { %122 = vadd.xlane.f32.xlu0 %v121_v32  ;;  %v1156_v60 = vld [vmem:[#allocation2 + $0x138] sm:$0xff]  ;;  %v1158_v61 = vld [vmem:[#allocation2 + $0x140] sm:$0xff]  ;;  %v145_v62 = vadd.f32 %v144_v53, %v1146_v55  ;;  %v152_v63 = vadd.f32 %v1152_v58, %v1150_v57  ;;  %v1164_v7 = vld [vmem:[#allocation2 + $0x130] sm:$0xff] }
  0x21   :  { %v149_v3 = vadd.f32 %v148_v56, %v1154_v59  ;;  %v156_v11 = vadd.f32 %v1158_v61, %v1156_v60  ;;  %v1168_v12 = vld [vmem:[#allocation2 + $0x150] sm:$0xff]  ;;  %v1170_v16 = vld [vmem:[#allocation2 + $0x158] sm:$0xff]  ;;  %v1172_v17 = vld [vmem:[#allocation2 + $0x148] sm:$0xff] }
  0x22   :  { %126 = vadd.xlane.f32.xlu1 %v125_v34  ;;  %v1174_v20 = vld [vmem:[#allocation2 + $0x168] sm:$0xff]  ;;  %v1176_v21 = vld [vmem:[#allocation2 + $0x170] sm:$0xff]  ;;  %v153_v24 = vadd.f32 %v152_v63, %v1164_v7  ;;  %v160_v26 = vadd.f32 %v1170_v16, %v1168_v12  ;;  %v1182_v33 = vld [vmem:[#allocation2 + $0x160] sm:$0xff] }
  0x23   :  { %1981 = vst [vmem:[#allocation8_spill] sm:$0xff] %v1176_v21  ;;  %v157_v32 = vadd.f32 %v156_v11, %v1172_v17  ;;  %v164_v34 = vadd.f32 %v1176_v21, %v1174_v20  ;;  %v1186_v36 = vld [vmem:[#allocation2 + $0x180] sm:$0xff]  ;;  %v1190_v43 = vld [vmem:[#allocation2 + $0x178] sm:$0xff]  ;;  %v1200_v56 = vld [vmem:[#allocation2 + $0x190] sm:$0xff] }
  0x24   :  { %130 = vadd.xlane.f32.xlu0 %v129_v42  ;;  %1982 = vst [vmem:[#allocation9_spill] sm:$0xff] %v1186_v36  ;;  %v1188_v42 = vld [vmem:[#allocation2 + $0x188] sm:$0xff]  ;;  %1984 = vst [vmem:[#allocation11_spill] sm:$0xff] %v1190_v43  ;;  %v1194_v46 = vld [vmem:[#allocation2 + $0x1a0] sm:$0xff] }
  0x25   :  { %1983 = vst [vmem:[#allocation10_spill] sm:$0xff] %v1188_v42  ;;  %1986 = vst [vmem:[#allocation13_spill] sm:$0xff] %v1194_v46  ;;  %v168_v53 = vadd.f32 %v1188_v42, %v1186_v36  ;;  %v1204_v63 = vld [vmem:[#allocation2 + $0x1b0] sm:$0xff]  ;;  %v1208_v11 = vld [vmem:[#allocation2 + $0x1a8] sm:$0xff] }
  0x26   :  { %134 = vadd.xlane.f32.xlu1 %v133_v44  ;;  %v1192_v44 = vld [vmem:[#allocation2 + $0x198] sm:$0xff]  ;;  %1987 = vst [vmem:[#allocation14_spill] sm:$0xff] %v1200_v56  ;;  %1988 = vst [vmem:[#allocation15_spill] sm:$0xff] %v1204_v63  ;;  %v1222_v36 = vld [vmem:[#allocation2 + $0x1e0] sm:$0xff] }
  0x27   :  { %1985 = vst [vmem:[#allocation12_spill] sm:$0xff] %v1192_v44  ;;  %1990 = vst [vmem:[#allocation17_spill] sm:$0xff] %v1208_v11  ;;  %v1226_v21 = vld [vmem:[#allocation2 + $0x1d8] sm:$0xff] }
  0x28   :  { %138 = vadd.xlane.f32.xlu0 %v137_v52  ;;  %v161_v52 = vadd.f32 %v160_v26, %v1182_v33  ;;  %v1212_v26 = vld [vmem:[#allocation2 + $0x1d0] sm:$0xff]  ;;  %1994 = vst [vmem:[#allocation21_spill] sm:$0xff] %v1222_v36  ;;  %1996 = vst [vmem:[#allocation23_spill] sm:$0xff] %v1226_v21 }
  0x29   :  { %1992 = vst [vmem:[#allocation19_spill] sm:$0xff] %v1212_v26 }
  0x2a   :  { %142 = vadd.xlane.f32.xlu1 %v141_v54  ;;  %v165_v54 = vadd.f32 %v164_v34, %v1190_v43  ;;  %v1224_v43 = vld [vmem:[#allocation2 + $0x1e8] sm:$0xff] }
  0x2b   :  { %1995 = vst [vmem:[#allocation22_spill] sm:$0xff] %v1224_v43 }
  0x2c   :  { %146 = vadd.xlane.f32.xlu0 %v145_v62  ;;  %v172_v62 = vadd.f32 %v1194_v46, %v1192_v44  ;;  %v1218_v46 = vld [vmem:[#allocation2 + $0x1c0] sm:$0xff] }
  0x2d   :  { %1993 = vst [vmem:[#allocation20_spill] sm:$0xff] %v1218_v46 }
  0x2e   :  { %150 = vadd.xlane.f32.xlu1 %v149_v3  ;;  %v1206_v3 = vld [vmem:[#allocation2 + $0x1b8] sm:$0xff]  ;;  %v173_v42 = vadd.f32 %v172_v62, %v1208_v11  ;;  %v184_v62 = vadd.f32 %v1224_v43, %v1222_v36  ;;  %v1258_v36 = vld [vmem:[#allocation2 + $0x240] sm:$0xff] }
  0x2f   :  { %1989 = vst [vmem:[#allocation16_spill] sm:$0xff] %v1206_v3  ;;  %v176_v34 = vadd.f32 %v1206_v3, %v1204_v63  ;;  %v1240_v63 = vld [vmem:[#allocation2 + $0x210] sm:$0xff]  ;;  %v1242_v11 = vld [vmem:[#allocation2 + $0x218] sm:$0xff] }
  0x30   :  { %154 = vadd.xlane.f32.xlu0 %v153_v24  ;;  %v1210_v24 = vld [vmem:[#allocation2 + $0x1c8] sm:$0xff]  ;;  %1999 = vst [vmem:[#allocation26_spill] sm:$0xff] %v1240_v63  ;;  %2000 = vst [vmem:[#allocation27_spill] sm:$0xff] %v1242_v11 }
  0x31   :  { %1991 = vst [vmem:[#allocation18_spill] sm:$0xff] %v1210_v24  ;;  %v180_v44 = vadd.f32 %v1212_v26, %v1210_v24  ;;  %v1236_v26 = vld [vmem:[#allocation2 + $0x1f0] sm:$0xff] }
  0x32   :  { %158 = vadd.xlane.f32.xlu1 %v157_v32  ;;  %v169_v32 = vadd.f32 %v168_v53, %v1200_v56  ;;  %v1230_v53 = vld [vmem:[#allocation2 + $0x200] sm:$0xff]  ;;  %v1244_v56 = vld [vmem:[#allocation2 + $0x208] sm:$0xff] }
  0x33   :  { %1998 = vst [vmem:[#allocation25_spill] sm:$0xff] %v1230_v53  ;;  %v181_v3 = vadd.f32 %v180_v44, %v1226_v21  ;;  %2001 = vst [vmem:[#allocation28_spill] sm:$0xff] %v1244_v56  ;;  %v192_v44 = vadd.f32 %v1242_v11, %v1240_v63  ;;  %v1260_v21 = vld [vmem:[#allocation2 + $0x248] sm:$0xff] }
  0x34   :  { %162 = vadd.xlane.f32.xlu0 %v161_v52  ;;  %v1228_v52 = vld [vmem:[#allocation2 + $0x1f8] sm:$0xff] }
  0x35   :  { %1997 = vst [vmem:[#allocation24_spill] sm:$0xff] %v1228_v52  ;;  %v188_v24 = vadd.f32 %v1230_v53, %v1228_v52  ;;  %v1254_v53 = vld [vmem:[#allocation2 + $0x220] sm:$0xff] }
  0x36   :  { %166 = vadd.xlane.f32.xlu1 %v165_v54  ;;  %v177_v54 = vadd.f32 %v176_v34, %v1218_v46  ;;  %v1248_v34 = vld [vmem:[#allocation2 + $0x230] sm:$0xff]  ;;  %v1262_v46 = vld [vmem:[#allocation2 + $0x238] sm:$0xff] }
  0x37   :  { %2003 = vst [vmem:[#allocation30_spill] sm:$0xff] %v1248_v34  ;;  %v189_v43 = vadd.f32 %v188_v24, %v1244_v56  ;;  %v1268_v24 = vld [vmem:[#allocation2 + $0x250] sm:$0xff] }
  0x38   :  { %170 = vadd.xlane.f32.xlu0 %v169_v32  ;;  %v1246_v32 = vld [vmem:[#allocation2 + $0x228] sm:$0xff]  ;;  %2004 = vst [vmem:[#allocation31_spill] sm:$0xff] %v1268_v24 }
  0x39   :  { %2002 = vst [vmem:[#allocation29_spill] sm:$0xff] %v1246_v32  ;;  %v196_v52 = vadd.f32 %v1248_v34, %v1246_v32 }
  0x3a   :  { %174 = vadd.xlane.f32.xlu1 %v173_v42  ;;  %v185_v42 = vadd.f32 %v184_v62, %v1236_v26  ;;  %v200_v62 = vadd.f32 %v1260_v21, %v1258_v36 }
  0x3c   :  { %178 = vadd.xlane.f32.xlu0 %v177_v54  ;;  %v193_v54 = vadd.f32 %v192_v44, %v1254_v53  ;;  %v201_v34 = vadd.f32 %v200_v62, %v1268_v24 }
  0x3e   :  { %182 = vadd.xlane.f32.xlu1 %v181_v3  ;;  %v197_v3 = vadd.f32 %v196_v52, %v1262_v46 }
  0x40   :  { %186 = vadd.xlane.f32.xlu0 %v185_v42 }
  0x42   :  { %190 = vadd.xlane.f32.xlu1 %v189_v43 }
  0x44   :  { %194 = vadd.xlane.f32.xlu0 %v193_v54 }
  0x46   :  { %198 = vadd.xlane.f32.xlu1 %v197_v3 }
  0x48   :  { %202 = vadd.xlane.f32.xlu0 %v201_v34 }
  0xa5   :  { %v107_v32 = vpop.xlane.xlu0 %106 }
  0xa6   :  { %v204_v11 = vmul.f32 0.0026041667, %v107_v32 }
  0xa7   :  { %v115_v63 = vpop.xlane.xlu1 %114 }
  0xa8   :  { %v206_v56 = vmul.f32 0.0026041667, %v115_v63  ;;  %v1272_v42 = vsub.f32 %v1046_v0, %v204_v11  ;;  %v1275_v44 = vsub.f32 %v1048_v1, %v204_v11  ;;  %v1278_v43 = vsub.f32 %v1050_v2, %v204_v11 }
  0xa9   :  { %v111_v32 = vpop.xlane.xlu0 %110 }
  0xaa   :  { %2005 = vst [vmem:[#allocation32_spill] sm:$0xff] %v1272_v42  ;;  %2006 = vst [vmem:[#allocation33_spill] sm:$0xff] %v1275_v44  ;;  %v1281_v52 = vsub.f32 %v1054_v4, %v206_v56  ;;  %v1284_v54 = vsub.f32 %v1056_v5, %v206_v56  ;;  %v1287_v34 = vsub.f32 %v1058_v6, %v206_v56  ;;  %v205_v63 = vmul.f32 0.0026041667, %v111_v32 }
  0xab   :  { %2007 = vst [vmem:[#allocation34_spill] sm:$0xff] %v1278_v43  ;;  %v119_v62 = vpop.xlane.xlu1 %118  ;;  %v304_v0 = vmul.f32 %v1272_v42, %v1272_v42  ;;  %v305_v1 = vmul.f32 %v1275_v44, %v1275_v44  ;;  %v306_v2 = vmul.f32 %v1278_v43, %v1278_v43 }
  0xac   :  { %2008 = vst [vmem:[#allocation35_spill] sm:$0xff] %v1281_v52  ;;  %2009 = vst [vmem:[#allocation36_spill] sm:$0xff] %v1284_v54  ;;  %v207_v4 = vmul.f32 0.0026041667, %v119_v62  ;;  %v310_v5 = vmul.f32 %v1281_v52, %v1281_v52  ;;  %v311_v6 = vmul.f32 %v1284_v54, %v1284_v54  ;;  %v312_v56 = vmul.f32 %v1287_v34, %v1287_v34 }
  0xad   :  { %2010 = vst [vmem:[#allocation37_spill] sm:$0xff] %v1287_v34  ;;  %v1302_v11 = vsub.f32 %v1062_v8, %v205_v63  ;;  %v1305_v3 = vsub.f32 %v1064_v9, %v205_v63  ;;  %v1308_v32 = vsub.f32 %v1066_v10, %v205_v63  ;;  %v379_v43 = vadd.f32 %v305_v1, %v304_v0  ;;  %v123_v34 = vpop.xlane.xlu0 %122 }
  0xae   :  { %v1311_v62 = vsub.f32 %v1071_v13, %v207_v4  ;;  %v1314_v52 = vsub.f32 %v1073_v14, %v207_v4  ;;  %v1317_v54 = vsub.f32 %v1075_v15, %v207_v4  ;;  %v387_v44 = vadd.f32 %v311_v6, %v310_v5 }
  0xaf   :  { %v208_v8 = vmul.f32 0.0026041667, %v123_v34  ;;  %v127_v42 = vpop.xlane.xlu1 %126  ;;  %v380_v24 = vadd.f32 %v379_v43, %v306_v2  ;;  %v307_v9 = vmul.f32 %v1302_v11, %v1302_v11  ;;  %v308_v10 = vmul.f32 %v1305_v3, %v1305_v3 }
  0xb0   :  { %v209_v63 = vmul.f32 0.0026041667, %v127_v42  ;;  %v388_v13 = vadd.f32 %v387_v44, %v312_v56  ;;  %v309_v14 = vmul.f32 %v1308_v32, %v1308_v32  ;;  %v313_v15 = vmul.f32 %v1311_v62, %v1311_v62 }
  0xb1   :  { %v1328_v0 = vsub.f32 %v1080_v18, %v208_v8  ;;  %v1331_v34 = vsub.f32 %v1082_v19, %v208_v8  ;;  %v1334_v43 = vsub.f32 %v1092_v25, %v208_v8  ;;  %381 = vadd.xlane.f32.xlu1 %v380_v24  ;;  %v383_v1 = vadd.f32 %v308_v10, %v307_v9  ;;  %v131_v4 = vpop.xlane.xlu0 %130 }
  0xb2   :  { %v1337_v42 = vsub.f32 %v1087_v22, %v209_v63  ;;  %v1340_v44 = vsub.f32 %v1089_v23, %v209_v63  ;;  %v1343_v2 = vsub.f32 %v1100_v29, %v209_v63  ;;  %v314_v18 = vmul.f32 %v1314_v52, %v1314_v52 }
  0xb3   :  { %v210_v19 = vmul.f32 0.0026041667, %v131_v4  ;;  %v135_v5 = vpop.xlane.xlu1 %134  ;;  %v384_v6 = vadd.f32 %v383_v1, %v309_v14  ;;  %v315_v25 = vmul.f32 %v1317_v54, %v1317_v54  ;;  %v316_v22 = vmul.f32 %v1328_v0, %v1328_v0 }
  0xb4   :  { %2011 = vst [vmem:[#allocation38_spill] sm:$0xff] %v1343_v2  ;;  %v211_v24 = vmul.f32 0.0026041667, %v135_v5  ;;  %v391_v56 = vadd.f32 %v314_v18, %v313_v15  ;;  %v317_v23 = vmul.f32 %v1331_v34, %v1331_v34  ;;  %v318_v29 = vmul.f32 %v1334_v43, %v1334_v43 }
  0xb5   :  { %v1356_v8 = vsub.f32 %v1096_v27, %v210_v19  ;;  %v1359_v9 = vsub.f32 %v1098_v28, %v210_v19  ;;  %v1362_v10 = vsub.f32 %v1110_v35, %v210_v19  ;;  %389 = vadd.xlane.f32.xlu1 %v388_v13  ;;  %385 = vadd.xlane.f32.xlu0 %v384_v6  ;;  %v139_v1 = vpop.xlane.xlu0 %138 }
  0xb6   :  { %v1365_v63 = vsub.f32 %v1102_v30, %v211_v24  ;;  %v1368_v14 = vsub.f32 %v1104_v31, %v211_v24  ;;  %v1371_v15 = vsub.f32 %v1118_v39, %v211_v24  ;;  %v392_v27 = vadd.f32 %v391_v56, %v315_v25 }
  0xb7   :  { %v212_v4 = vmul.f32 0.0026041667, %v139_v1  ;;  %v143_v18 = vpop.xlane.xlu1 %142  ;;  %v395_v28 = vadd.f32 %v317_v23, %v316_v22  ;;  %v319_v35 = vmul.f32 %v1337_v42, %v1337_v42  ;;  %v320_v13 = vmul.f32 %v1340_v44, %v1340_v44 }
  0xb8   :  { %v213_v19 = vmul.f32 0.0026041667, %v143_v18  ;;  %v321_v30 = vmul.f32 %v1343_v2, %v1343_v2  ;;  %v322_v31 = vmul.f32 %v1356_v8, %v1356_v8  ;;  %v323_v39 = vmul.f32 %v1359_v9, %v1359_v9 }
  0xb9   :  { %v1384_v5 = vsub.f32 %v1114_v37, %v212_v4  ;;  %393 = vadd.xlane.f32.xlu0 %v392_v27  ;;  %v396_v6 = vadd.f32 %v395_v28, %v318_v29  ;;  %v1387_v25 = vsub.f32 %v1116_v38, %v212_v4  ;;  %v147_v56 = vpop.xlane.xlu0 %146  ;;  %v399_v23 = vadd.f32 %v320_v13, %v319_v35 }
  0xba   :  { %v1390_v22 = vsub.f32 %v1120_v40, %v213_v19  ;;  %v1393_v24 = vsub.f32 %v1122_v41, %v213_v19  ;;  %v214_v1 = vmul.f32 0.0026041667, %v147_v56  ;;  %v324_v37 = vmul.f32 %v1362_v10, %v1362_v10 }
  0xbb   :  { %397 = vadd.xlane.f32.xlu1 %v396_v6  ;;  %v151_v18 = vpop.xlane.xlu1 %150  ;;  %v403_v2 = vadd.f32 %v323_v39, %v322_v31  ;;  %v325_v29 = vmul.f32 %v1365_v63, %v1365_v63  ;;  %v400_v27 = vadd.f32 %v399_v23, %v321_v30  ;;  %v326_v40 = vmul.f32 %v1368_v14, %v1368_v14 }
  0xbc   :  { %v215_v38 = vmul.f32 0.0026041667, %v151_v18  ;;  %v327_v41 = vmul.f32 %v1371_v15, %v1371_v15  ;;  %v1404_v28 = vsub.f32 %v1128_v45, %v212_v4  ;;  %v1407_v35 = vsub.f32 %v1136_v49, %v213_v19 }
  0xbd   :  { %v1410_v13 = vsub.f32 %v1132_v47, %v214_v1  ;;  %v404_v31 = vadd.f32 %v403_v2, %v324_v37  ;;  %v1413_v39 = vsub.f32 %v1134_v48, %v214_v1  ;;  %v1416_v30 = vsub.f32 %v1146_v55, %v214_v1  ;;  %401 = vadd.xlane.f32.xlu0 %v400_v27  ;;  %v155_v56 = vpop.xlane.xlu0 %154 }
  0xbe   :  { %v1419_v6 = vsub.f32 %v1138_v50, %v215_v38  ;;  %v407_v45 = vadd.f32 %v326_v40, %v325_v29  ;;  %v1422_v4 = vsub.f32 %v1140_v51, %v215_v38  ;;  %v216_v49 = vmul.f32 0.0026041667, %v155_v56 }
  0xbf   :  { %405 = vadd.xlane.f32.xlu1 %v404_v31  ;;  %v159_v47 = vpop.xlane.xlu1 %158  ;;  %v328_v2 = vmul.f32 %v1384_v5, %v1384_v5  ;;  %v329_v48 = vmul.f32 %v1387_v25, %v1387_v25  ;;  %v331_v50 = vmul.f32 %v1390_v22, %v1390_v22  ;;  %v332_v23 = vmul.f32 %v1393_v24, %v1393_v24 }
  0xc0   :  { %2012 = vst [vmem:[#allocation39_spill] sm:$0xff] %v1419_v6  ;;  %2013 = vst [vmem:[#allocation40_spill] sm:$0xff] %v1422_v4  ;;  %v217_v55 = vmul.f32 0.0026041667, %v159_v47  ;;  %v408_v19 = vadd.f32 %v407_v45, %v327_v41  ;;  %v1433_v51 = vsub.f32 %v1154_v59, %v215_v38  ;;  %v1436_v1 = vsub.f32 %v1150_v57, %v216_v49 }
  0xc1   :  { %v330_v18 = vmul.f32 %v1404_v28, %v1404_v28  ;;  %v411_v37 = vadd.f32 %v329_v48, %v328_v2  ;;  %v1441_v29 = vsub.f32 %v1152_v58, %v216_v49  ;;  %v1444_v27 = vsub.f32 %v1164_v7, %v216_v49  ;;  %v163_v41 = vpop.xlane.xlu0 %162 }
  0xc2   :  { %2014 = vst [vmem:[#allocation41_spill] sm:$0xff] %v1433_v51  ;;  %2015 = vst [vmem:[#allocation42_spill] sm:$0xff] %v1436_v1  ;;  %v1447_v40 = vsub.f32 %v1156_v60, %v217_v55  ;;  %409 = vadd.xlane.f32.xlu0 %v408_v19  ;;  %v333_v59 = vmul.f32 %v1407_v35, %v1407_v35  ;;  %v218_v38 = vmul.f32 0.0026041667, %v163_v41 }
  0xc3   :  { %2016 = vst [vmem:[#allocation43_spill] sm:$0xff] %v1441_v29  ;;  %2017 = vst [vmem:[#allocation44_spill] sm:$0xff] %v1444_v27  ;;  %v412_v57 = vadd.f32 %v411_v37, %v330_v18  ;;  %v167_v31 = vpop.xlane.xlu1 %166  ;;  %v415_v56 = vadd.f32 %v332_v23, %v331_v50  ;;  %v334_v45 = vmul.f32 %v1410_v13, %v1410_v13 }
  0xc4   :  { %2018 = vst [vmem:[#allocation45_spill] sm:$0xff] %v1447_v40  ;;  %v1454_v58 = vsub.f32 %v1158_v61, %v217_v55  ;;  %v1457_v7 = vsub.f32 %v1172_v17, %v217_v55  ;;  %v219_v60 = vmul.f32 0.0026041667, %v167_v31  ;;  %v335_v49 = vmul.f32 %v1413_v39, %v1413_v39  ;;  %v2027_v31 = vld [vmem:[#allocation11_spill] sm:$0xff] }
  0xc5   :  { %413 = vadd.xlane.f32.xlu1 %v412_v57  ;;  %v1462_v47 = vsub.f32 %v1168_v12, %v218_v38  ;;  %v416_v2 = vadd.f32 %v415_v56, %v333_v59  ;;  %v336_v48 = vmul.f32 %v1416_v30, %v1416_v30  ;;  %v337_v19 = vmul.f32 %v1419_v6, %v1419_v6  ;;  %v171_v23 = vpop.xlane.xlu0 %170  ;;  %v2025_v59 = vld [vmem:[#allocation8_spill] sm:$0xff] }
  0xc6   :  { %2019 = vst [vmem:[#allocation46_spill] sm:$0xff] %v1454_v58  ;;  %2020 = vst [vmem:[#allocation47_spill] sm:$0xff] %v1457_v7  ;;  %v1469_v61 = vsub.f32 %v1170_v16, %v218_v38  ;;  %v1472_v17 = vsub.f32 %v1182_v33, %v218_v38  ;;  %v1475_v55 = vsub.f32 %v1174_v20, %v219_v60  ;;  %v220_v12 = vmul.f32 0.0026041667, %v171_v23 }
  0xc7   :  { %2021 = vst [vmem:[#allocation48_spill] sm:$0xff] %v1462_v47  ;;  %v419_v50 = vadd.f32 %v335_v49, %v334_v45  ;;  %417 = vadd.xlane.f32.xlu0 %v416_v2  ;;  %v175_v18 = vpop.xlane.xlu1 %174  ;;  %v338_v37 = vmul.f32 %v1422_v4, %v1422_v4  ;;  %v339_v41 = vmul.f32 %v1433_v51, %v1433_v51  ;;  %v2029_v45 = vld [vmem:[#allocation9_spill] sm:$0xff]  ;;  %v2031_v51 = vld [vmem:[#allocation10_spill] sm:$0xff] }
  0xc8   :  { %2022 = vst [vmem:[#allocation49_spill] sm:$0xff] %v1469_v61  ;;  %2023 = vst [vmem:[#allocation50_spill] sm:$0xff] %v1472_v17  ;;  %v340_v16 = vmul.f32 %v1436_v1, %v1436_v1  ;;  %v1484_v33 = vsub.f32 %v2025_v59, %v219_v60  ;;  %v221_v20 = vmul.f32 0.0026041667, %v175_v18  ;;  %v341_v38 = vmul.f32 %v1441_v29, %v1441_v29  ;;  %v2033_v59 = vld [vmem:[#allocation14_spill] sm:$0xff] }
  0xc9   :  { %2024 = vst [vmem:[#allocation51_spill] sm:$0xff] %v1475_v55  ;;  %v420_v57 = vadd.f32 %v419_v50, %v336_v48  ;;  %v1489_v56 = vsub.f32 %v2027_v31, %v219_v60  ;;  %v1492_v49 = vsub.f32 %v2029_v45, %v220_v12  ;;  %v423_v2 = vadd.f32 %v338_v37, %v337_v19  ;;  %v2034_v50 = vld [vmem:[#allocation12_spill] sm:$0xff]  ;;  %v179_v60 = vpop.xlane.xlu0 %178 }
  0xca   :  { %2026 = vst [vmem:[#allocation8_spill] sm:$0xff] %v1484_v33  ;;  %v342_v23 = vmul.f32 %v1444_v27, %v1444_v27  ;;  %v1497_v4 = vsub.f32 %v2031_v51, %v220_v12  ;;  %v1500_v48 = vsub.f32 %v2033_v59, %v220_v12  ;;  %v1503_v18 = vsub.f32 %v2034_v50, %v221_v20  ;;  %v2036_v50 = vld [vmem:[#allocation13_spill] sm:$0xff] }
  0xcb   :  { %2028 = vst [vmem:[#allocation11_spill] sm:$0xff] %v1489_v56  ;;  %2030 = vst [vmem:[#allocation9_spill] sm:$0xff] %v1492_v49  ;;  %421 = vadd.xlane.f32.xlu1 %v420_v57  ;;  %v427_v6 = vadd.f32 %v341_v38, %v340_v16  ;;  %v424_v31 = vadd.f32 %v423_v2, %v339_v41  ;;  %v222_v29 = vmul.f32 0.0026041667, %v179_v60  ;;  %v183_v45 = vpop.xlane.xlu1 %182  ;;  %v2038_v41 = vld [vmem:[#allocation17_spill] sm:$0xff]  ;;  %v2040_v2 = vld [vmem:[#allocation15_spill] sm:$0xff] }
  0xcc   :  { %2032 = vst [vmem:[#allocation10_spill] sm:$0xff] %v1497_v4  ;;  %2035 = vst [vmem:[#allocation14_spill] sm:$0xff] %v1503_v18  ;;  %v343_v19 = vmul.f32 %v1447_v40, %v1447_v40  ;;  %v344_v37 = vmul.f32 %v1454_v58, %v1454_v58  ;;  %v223_v51 = vmul.f32 0.0026041667, %v183_v45  ;;  %v345_v12 = vmul.f32 %v1457_v7, %v1457_v7  ;;  %v2042_v45 = vld [vmem:[#allocation20_spill] sm:$0xff]  ;;  %v2043_v58 = vld [vmem:[#allocation18_spill] sm:$0xff] }
  0xcd   :  { %v428_v57 = vadd.f32 %v427_v6, %v342_v23  ;;  %v346_v59 = vmul.f32 %v1462_v47, %v1462_v47  ;;  %v1514_v16 = vsub.f32 %v2036_v50, %v221_v20  ;;  %v1517_v38 = vsub.f32 %v2038_v41, %v221_v20  ;;  %425 = vadd.xlane.f32.xlu0 %v424_v31  ;;  %v2041_v6 = vld [vmem:[#allocation16_spill] sm:$0xff]  ;;  %v187_v20 = vpop.xlane.xlu0 %186  ;;  %v2045_v41 = vld [vmem:[#allocation19_spill] sm:$0xff] }
  0xce   :  { %v1520_v60 = vsub.f32 %v2040_v2, %v222_v29  ;;  %v431_v40 = vadd.f32 %v344_v37, %v343_v19  ;;  %v1523_v23 = vsub.f32 %v2041_v6, %v222_v29  ;;  %v1526_v7 = vsub.f32 %v2042_v45, %v222_v29  ;;  %v2046_v45 = vld [vmem:[#allocation23_spill] sm:$0xff] }
  0xcf   :  { %2037 = vst [vmem:[#allocation12_spill] sm:$0xff] %v1514_v16  ;;  %2039 = vst [vmem:[#allocation13_spill] sm:$0xff] %v1517_v38  ;;  %429 = vadd.xlane.f32.xlu1 %v428_v57  ;;  %v1529_v47 = vsub.f32 %v2043_v58, %v223_v51  ;;  %v347_v50 = vmul.f32 %v1469_v61, %v1469_v61  ;;  %v1534_v31 = vsub.f32 %v2045_v41, %v223_v51  ;;  %v191_v19 = vpop.xlane.xlu1 %190  ;;  %v2047_v41 = vld [vmem:[#allocation21_spill] sm:$0xff] }
  0xd0   :  { %v432_v2 = vadd.f32 %v431_v40, %v345_v12  ;;  %v224_v27 = vmul.f32 0.0026041667, %v187_v20  ;;  %v349_v37 = vmul.f32 %v1475_v55, %v1475_v55  ;;  %v348_v29 = vmul.f32 %v1472_v17, %v1472_v17  ;;  %v2048_v55 = vld [vmem:[#allocation22_spill] sm:$0xff] }
  0xd1   :  { %2044 = vst [vmem:[#allocation17_spill] sm:$0xff] %v1529_v47  ;;  %v435_v57 = vadd.f32 %v347_v50, %v346_v59  ;;  %v225_v6 = vmul.f32 0.0026041667, %v191_v19  ;;  %v350_v58 = vmul.f32 %v1484_v33, %v1484_v33  ;;  %v1543_v61 = vsub.f32 %v2046_v45, %v223_v51  ;;  %v2049_v19 = vld [vmem:[#allocation24_spill] sm:$0xff]  ;;  %v2051_v45 = vld [vmem:[#allocation25_spill] sm:$0xff] }
  0xd2   :  { %433 = vadd.xlane.f32.xlu0 %v432_v2  ;;  %v1546_v1 = vsub.f32 %v2047_v41, %v224_v27  ;;  %v351_v40 = vmul.f32 %v1489_v56, %v1489_v56  ;;  %v352_v12 = vmul.f32 %v1492_v49, %v1492_v49  ;;  %v1553_v59 = vsub.f32 %v2048_v55, %v224_v27  ;;  %v195_v2 = vpop.xlane.xlu0 %194 }
  0xd3   :  { %v436_v20 = vadd.f32 %v435_v57, %v348_v29  ;;  %v1556_v50 = vsub.f32 %v1236_v26, %v224_v27  ;;  %v1559_v51 = vsub.f32 %v2049_v19, %v225_v6  ;;  %v1562_v41 = vsub.f32 %v2051_v45, %v225_v6  ;;  %v199_v49 = vpop.xlane.xlu1 %198  ;;  %v2053_v29 = vld [vmem:[#allocation28_spill] sm:$0xff]  ;;  %v2055_v45 = vld [vmem:[#allocation26_spill] sm:$0xff] }
  0xd4   :  { %v439_v33 = vadd.f32 %v350_v58, %v349_v37  ;;  %v353_v56 = vmul.f32 %v1497_v4, %v1497_v4  ;;  %v226_v17 = vmul.f32 0.0026041667, %v195_v2  ;;  %v1567_v55 = vsub.f32 %v2053_v29, %v225_v6  ;;  %v2056_v6 = vld [vmem:[#allocation27_spill] sm:$0xff] }
  0xd5   :  { %2050 = vst [vmem:[#allocation15_spill] sm:$0xff] %v1559_v51  ;;  %2052 = vst [vmem:[#allocation16_spill] sm:$0xff] %v1562_v41  ;;  %437 = vadd.xlane.f32.xlu1 %v436_v20  ;;  %v227_v57 = vmul.f32 0.0026041667, %v199_v49  ;;  %v355_v26 = vmul.f32 %v1503_v18, %v1503_v18  ;;  %v356_v27 = vmul.f32 %v1514_v16, %v1514_v16  ;;  %v2057_v18 = vld [vmem:[#allocation29_spill] sm:$0xff] }
  0xd6   :  { %2054 = vst [vmem:[#allocation20_spill] sm:$0xff] %v1567_v55  ;;  %v440_v19 = vadd.f32 %v439_v33, %v351_v40  ;;  %v354_v37 = vmul.f32 %v1500_v48, %v1500_v48  ;;  %v443_v58 = vadd.f32 %v353_v56, %v352_v12  ;;  %v357_v2 = vmul.f32 %v1517_v38, %v1517_v38  ;;  %v203_v33 = vpop.xlane.xlu0 %202 }
  0xd7   :  { %v1578_v20 = vsub.f32 %v2055_v45, %v226_v17  ;;  %v1581_v29 = vsub.f32 %v2056_v6, %v226_v17  ;;  %v1584_v49 = vsub.f32 %v1254_v53, %v226_v17  ;;  %v1587_v4 = vsub.f32 %v2057_v18, %v227_v57 }
  0xd8   :  { %441 = vadd.xlane.f32.xlu0 %v440_v19  ;;  %v444_v40 = vadd.f32 %v443_v58, %v354_v37  ;;  %v447_v16 = vadd.f32 %v356_v27, %v355_v26  ;;  %v358_v56 = vmul.f32 %v1520_v60, %v1520_v60  ;;  %v359_v12 = vmul.f32 %v1523_v23, %v1523_v23  ;;  %v2059_v37 = vld [vmem:[#allocation30_spill] sm:$0xff] }
  0xd9   :  { %2058 = vst [vmem:[#allocation18_spill] sm:$0xff] %v1587_v4  ;;  %v360_v45 = vmul.f32 %v1526_v7, %v1526_v7  ;;  %v228_v6 = vmul.f32 0.0026041667, %v203_v33  ;;  %v361_v53 = vmul.f32 %v1529_v47, %v1529_v47  ;;  %v362_v17 = vmul.f32 %v1534_v31, %v1534_v31 }
  0xda   :  { %445 = vadd.xlane.f32.xlu1 %v444_v40  ;;  %v448_v18 = vadd.f32 %v447_v16, %v357_v2  ;;  %v451_v19 = vadd.f32 %v359_v12, %v358_v56  ;;  %v363_v26 = vmul.f32 %v1543_v61, %v1543_v61  ;;  %v364_v27 = vmul.f32 %v1546_v1, %v1546_v1 }
  0xdb   :  { %v1604_v58 = vsub.f32 %v2059_v37, %v227_v57  ;;  %v1607_v33 = vsub.f32 %v1262_v46, %v227_v57  ;;  %v1610_v47 = vsub.f32 %v1258_v36, %v228_v6  ;;  %v455_v38 = vadd.f32 %v362_v17, %v361_v53  ;;  %v2064_v17 = vld [vmem:[#allocation31_spill] sm:$0xff] }
  0xdc   :  { %449 = vadd.xlane.f32.xlu0 %v448_v18  ;;  %v452_v40 = vadd.f32 %v451_v19, %v360_v45  ;;  %v1613_v16 = vsub.f32 %v1260_v21, %v228_v6  ;;  %v365_v2 = vmul.f32 %v1553_v59, %v1553_v59  ;;  %v367_v56 = vmul.f32 %v1559_v51, %v1559_v51  ;;  %v2071_v51 = vld [vmem:[#allocation37_spill] sm:$0xff] }
  0xdd   :  { %2060 = vst [vmem:[#allocation19_spill] sm:$0xff] %v1604_v58  ;;  %2061 = vst [vmem:[#allocation23_spill] sm:$0xff] %v1607_v33  ;;  %v456_v12 = vadd.f32 %v455_v38, %v363_v26  ;;  %v366_v46 = vmul.f32 %v1556_v50, %v1556_v50  ;;  %v368_v36 = vmul.f32 %v1562_v41, %v1562_v41 }
  0xde   :  { %2062 = vst [vmem:[#allocation21_spill] sm:$0xff] %v1610_v47  ;;  %2063 = vst [vmem:[#allocation22_spill] sm:$0xff] %v1613_v16  ;;  %v370_v57 = vmul.f32 %v1578_v20, %v1578_v20  ;;  %453 = vadd.xlane.f32.xlu1 %v452_v40  ;;  %v459_v45 = vadd.f32 %v365_v2, %v364_v27  ;;  %v369_v21 = vmul.f32 %v1567_v55, %v1567_v55 }
  0xdf   :  { %v371_v53 = vmul.f32 %v1581_v29, %v1581_v29  ;;  %v373_v38 = vmul.f32 %v1587_v4, %v1587_v4  ;;  %v1632_v18 = vsub.f32 %v2064_v17, %v228_v6  ;;  %v463_v19 = vadd.f32 %v368_v36, %v367_v56 }
  0xe0   :  { %v374_v26 = vmul.f32 %v1604_v58, %v1604_v58  ;;  %v376_v37 = vmul.f32 %v1610_v47, %v1610_v47  ;;  %457 = vadd.xlane.f32.xlu0 %v456_v12  ;;  %v460_v27 = vadd.f32 %v459_v45, %v366_v46  ;;  %v372_v40 = vmul.f32 %v1584_v49, %v1584_v49 }
  0xe1   :  { %2065 = vst [vmem:[#allocation24_spill] sm:$0xff] %v1632_v18  ;;  %v467_v2 = vadd.f32 %v371_v53, %v370_v57  ;;  %v377_v55 = vmul.f32 %v1613_v16, %v1613_v16  ;;  %v375_v6 = vmul.f32 %v1607_v33, %v1607_v33  ;;  %v464_v56 = vadd.f32 %v463_v19, %v369_v21 }
  0xe2   :  { %461 = vadd.xlane.f32.xlu1 %v460_v27  ;;  %v471_v17 = vadd.f32 %v374_v26, %v373_v38  ;;  %v378_v12 = vmul.f32 %v1632_v18, %v1632_v18  ;;  %v631_v53 = vlaneseq }
  0xe3   :  { %v468_v36 = vadd.f32 %v467_v2, %v372_v40  ;;  %v475_v58 = vadd.f32 %v377_v55, %v376_v37 }
  0xe4   :  { %465 = vadd.xlane.f32.xlu0 %v464_v56  ;;  %v472_v46 = vadd.f32 %v471_v17, %v375_v6  ;;  %v632_v27 = vshrl.u32 %v631_v53, 7 }
  0xe5   :  { %v476_v45 = vadd.f32 %v475_v58, %v378_v12  ;;  %v629_v58 = vld [vmem:[%s1917_s1] sm:$0x7]  ;;  %s1010_s1 = smov [#allocation5]  }
  0xe6   :  { %469 = vadd.xlane.f32.xlu1 %v468_v36  ;;  %v633_v37 = vsub.s32 0, %v632_v27  ;;  %v637_v2 = vsub.s32 1, %v632_v27  ;;  %v641_v6 = vsub.s32 2, %v632_v27 }
  0xe8   :  { %473 = vadd.xlane.f32.xlu0 %v472_v46  ;;  %v1652_v56 = vrot.slane %v629_v58, %v633_v37  ;;  %v1654_v12 = vrot.slane %v629_v58, %v637_v2  ;;  %v1656_v46 = vrot.slane %v629_v58, %v641_v6 }
  0xea   :  { %477 = vadd.xlane.f32.xlu1 %v476_v45 }
 0x13e   :  { %v382_v57 = vpop.xlane.xlu1 %381 }
 0x13f   :  { %v479_v4 = vmul.f32 0.0026041667, %v382_v57 }
 0x141   :  { %v504_v16 = vadd.f32 1e-06, %v479_v4 }
 0x142   :  { %v390_v47 = vpop.xlane.xlu1 %389  ;;  %v386_v33 = vpop.xlane.xlu0 %385 }
 0x143   :  { %909 = vrsqrt.f32 %v504_v16  ;;  %v481_v21 = vmul.f32 0.0026041667, %v390_v47  ;;  %v480_v38 = vmul.f32 0.0026041667, %v386_v33  ;;  %v721_v16 = vld [vmem:[%s1918_s2] sm:$0x7] }
 0x144   :  { %v1658_v45 = vrot.slane %v721_v16, %v633_v37  ;;  %s893_s2 = sshll.u32 %s1010_s1, 4  ;;  %s894_s2 = int_to_ptr.vmem [resolvable:$true] %s893_s2 }
 0x145   :  { %v506_v55 = vadd.f32 1e-06, %v481_v21  ;;  %v505_v19 = vadd.f32 1e-06, %v480_v38  ;;  %v1660_v21 = vrot.slane %v721_v16, %v637_v2  ;;  %v1662_v38 = vrot.slane %v721_v16, %v641_v6  ;;  %s981_s29 = scalar_lea.vmem %s894_s2, 9600  ;;  %p986_p9 = scmp.lt.s32.totalorder %s894_s2, %s894_s2 }
 0x146   :  { %v394_v26 = vpop.xlane.xlu0 %393  ;;  %p982_p8 = scmp.ne.s32.totalorder %s894_s2, %s981_s29  ;;  %p987_p10 = scmp.lt.s32.totalorder %s981_s29, %s981_s29 }
 0x147   :  { %911 = vrsqrt.f32 %v506_v55  ;;  %v482_v40 = vmul.f32 0.0026041667, %v394_v26 }
 0x148   :  { %913 = vrsqrt.f32 %v505_v19  ;;  %v398_v4 = vpop.xlane.xlu1 %397  ;;  %v2066_v19 = vld [vmem:[#allocation32_spill] sm:$0xff]  ;;  %p988_p11 = por %p987_p10, %p986_p9 }
 0x149   :  { %v483_v47 = vmul.f32 0.0026041667, %v398_v4  ;;  %v507_v33 = vadd.f32 1e-06, %v482_v40  ;;  %v2067_v40 = vld [vmem:[#allocation33_spill] sm:$0xff] }
 0x14a   :  { %v402_v17 = vpop.xlane.xlu0 %401  ;;  %p989_p12 = pnand %p988_p11, %p982_p8 }
 0x14b   :  { %v508_v36 = vadd.f32 1e-06, %v483_v47  ;;  %915 = vrsqrt.f32 %v507_v33  ;;  %v484_v53 = vmul.f32 0.0026041667, %v402_v17  ;;  %v2068_v47 = vld [vmem:[#allocation34_spill] sm:$0xff] }
 0x14c   :  { %v406_v57 = vpop.xlane.xlu1 %405 }
 0x14d   :  { %v910_v27 = vpop.eup %909  ;;  %917 = vrsqrt.f32 %v508_v36  ;;  %v485_v55 = vmul.f32 0.0026041667, %v406_v57  ;;  %v509_v18 = vadd.f32 1e-06, %v484_v53  ;;  %v2069_v53 = vld [vmem:[#allocation35_spill] sm:$0xff] }
 0x14e   :  { %v554_v26 = vmul.f32 %v910_v27, %v2066_v19  ;;  %v555_v4 = vmul.f32 %v910_v27, %v2067_v40  ;;  %v556_v33 = vmul.f32 %v910_v27, %v2068_v47  ;;  %v2070_v47 = vld [vmem:[#allocation36_spill] sm:$0xff] }
 0x14f   :  { %v510_v58 = vadd.f32 1e-06, %v485_v55  ;;  %v410_v41 = vpop.xlane.xlu0 %409  ;;  %919 = vrsqrt.f32 %v509_v18 }
 0x150   :  { %v646_v37 = vmul.f32 %v1652_v56, %v554_v26  ;;  %v647_v17 = vmul.f32 %v1654_v12, %v555_v4  ;;  %v648_v2 = vmul.f32 %v1656_v46, %v556_v33  ;;  %v486_v16 = vmul.f32 0.0026041667, %v410_v41 }
 0x151   :  { %v912_v6 = vpop.eup %911  ;;  %921 = vrsqrt.f32 %v510_v58 }
 0x152   :  { %v914_v36 = vpop.eup %913  ;;  %v738_v57 = vadd.f32 %v1658_v45, %v646_v37  ;;  %v739_v19 = vadd.f32 %v1660_v21, %v647_v17  ;;  %v740_v27 = vadd.f32 %v1662_v38, %v648_v2  ;;  %v560_v55 = vmul.f32 %v912_v6, %v2069_v53  ;;  %v414_v40 = vpop.xlane.xlu1 %413 }
 0x153   :  { %v561_v26 = vmul.f32 %v912_v6, %v2070_v47  ;;  %v562_v4 = vmul.f32 %v912_v6, %v2071_v51  ;;  %v557_v33 = vmul.f32 %v914_v36, %v1302_v11  ;;  %v558_v18 = vmul.f32 %v914_v36, %v1305_v3 }
 0x154   :  { %813 = vst [vmem:[#allocation5] sm:$0xff] %v738_v57  ;;  %814 = vst [vmem:[#allocation5 + $0x8] sm:$0xff] %v739_v19  ;;  %v652_v41 = vmul.f32 %v1652_v56, %v560_v55  ;;  %v559_v58 = vmul.f32 %v914_v36, %v1308_v32  ;;  %v487_v37 = vmul.f32 0.0026041667, %v414_v40  ;;  %v511_v17 = vadd.f32 1e-06, %v486_v16  ;;  %v1680_v2 = vpop.xlane.xlu0 %417 }
 0x155   :  { %815 = vst [vmem:[#allocation5 + $0x10] sm:$0xff] %v740_v27  ;;  %v916_v53 = vpop.eup %915  ;;  %v653_v47 = vmul.f32 %v1654_v12, %v561_v26  ;;  %v654_v51 = vmul.f32 %v1656_v46, %v562_v4  ;;  %v649_v11 = vmul.f32 %v1652_v56, %v557_v33  ;;  %v650_v3 = vmul.f32 %v1654_v12, %v558_v18 }
 0x156   :  { %v744_v6 = vadd.f32 %v1658_v45, %v652_v41  ;;  %v651_v57 = vmul.f32 %v1656_v46, %v559_v58  ;;  %v563_v19 = vmul.f32 %v916_v53, %v1311_v62  ;;  %v564_v32 = vmul.f32 %v916_v53, %v1314_v52 }
 0x157   :  { %v918_v16 = vpop.eup %917  ;;  %v745_v36 = vadd.f32 %v1660_v21, %v653_v47  ;;  %v746_v27 = vadd.f32 %v1662_v38, %v654_v51  ;;  %v741_v55 = vadd.f32 %v1658_v45, %v649_v11  ;;  %v742_v40 = vadd.f32 %v1660_v21, %v650_v3 }
 0x158   :  { %v422_v26 = vpop.xlane.xlu1 %421  ;;  %819 = vst [vmem:[#allocation5 + $0x30] sm:$0xff] %v744_v6  ;;  %v743_v4 = vadd.f32 %v1662_v38, %v651_v57  ;;  %v566_v33 = vmul.f32 %v918_v16, %v1328_v0  ;;  %v567_v18 = vmul.f32 %v918_v16, %v1331_v34  ;;  %v568_v62 = vmul.f32 %v918_v16, %v1334_v43 }
 0x159   :  { %820 = vst [vmem:[#allocation5 + $0x38] sm:$0xff] %v745_v36  ;;  %821 = vst [vmem:[#allocation5 + $0x40] sm:$0xff] %v746_v27  ;;  %v565_v52 = vmul.f32 %v916_v53, %v1317_v54  ;;  %v655_v41 = vmul.f32 %v1652_v56, %v563_v19  ;;  %v656_v58 = vmul.f32 %v1654_v12, %v564_v32  ;;  %v512_v47 = vadd.f32 1e-06, %v487_v37  ;;  %v920_v51 = vpop.eup %919 }
 0x15a   :  { %816 = vst [vmem:[#allocation5 + $0x18] sm:$0xff] %v741_v55  ;;  %817 = vst [vmem:[#allocation5 + $0x20] sm:$0xff] %v742_v40  ;;  %v658_v11 = vmul.f32 %v1652_v56, %v566_v33  ;;  %v659_v0 = vmul.f32 %v1654_v12, %v567_v18  ;;  %v660_v34 = vmul.f32 %v1656_v46, %v568_v62  ;;  %923 = vrsqrt.f32 %v511_v17  ;;  %v426_v43 = vpop.xlane.xlu0 %425 }
 0x15b   :  { %818 = vst [vmem:[#allocation5 + $0x28] sm:$0xff] %v743_v4  ;;  %v922_v3 = vpop.eup %921  ;;  %v657_v6 = vmul.f32 %v1656_v46, %v565_v52  ;;  %v747_v54 = vadd.f32 %v1658_v45, %v655_v41  ;;  %v748_v53 = vadd.f32 %v1660_v21, %v656_v58  ;;  %v569_v57 = vmul.f32 %v920_v51, %v1337_v42  ;;  %v2072_v4 = vld [vmem:[#allocation38_spill] sm:$0xff] }
 0x15c   :  { %v430_v37 = vpop.xlane.xlu1 %429  ;;  %v750_v19 = vadd.f32 %v1658_v45, %v658_v11  ;;  %v751_v32 = vadd.f32 %v1660_v21, %v659_v0  ;;  %v752_v16 = vadd.f32 %v1662_v38, %v660_v34  ;;  %v572_v36 = vmul.f32 %v922_v3, %v1356_v8 }
 0x15d   :  { %v749_v17 = vadd.f32 %v1662_v38, %v657_v6  ;;  %822 = vst [vmem:[#allocation5 + $0x48] sm:$0xff] %v747_v54  ;;  %823 = vst [vmem:[#allocation5 + $0x50] sm:$0xff] %v748_v53  ;;  %v573_v27 = vmul.f32 %v922_v3, %v1359_v9  ;;  %v574_v55 = vmul.f32 %v922_v3, %v1362_v10  ;;  %925 = vrsqrt.f32 %v512_v47 }
 0x15e   :  { %v570_v40 = vmul.f32 %v920_v51, %v1340_v44  ;;  %825 = vst [vmem:[#allocation5 + $0x60] sm:$0xff] %v750_v19  ;;  %826 = vst [vmem:[#allocation5 + $0x68] sm:$0xff] %v751_v32  ;;  %v664_v42 = vmul.f32 %v1652_v56, %v572_v36  ;;  %v571_v33 = vmul.f32 %v920_v51, %v2072_v4  ;;  %v489_v52 = vmul.f32 0.0026041667, %v422_v26 }
 0x15f   :  { %827 = vst [vmem:[#allocation5 + $0x70] sm:$0xff] %v752_v16  ;;  %v661_v18 = vmul.f32 %v1652_v56, %v569_v57  ;;  %v434_v8 = vpop.xlane.xlu0 %433  ;;  %824 = vst [vmem:[#allocation5 + $0x58] sm:$0xff] %v749_v17  ;;  %v665_v62 = vmul.f32 %v1654_v12, %v573_v27  ;;  %v666_v9 = vmul.f32 %v1656_v46, %v574_v55  ;;  %v488_v51 = vmul.f32 0.0026041667, %v1680_v2 }
 0x160   :  { %v662_v10 = vmul.f32 %v1654_v12, %v570_v40  ;;  %v756_v44 = vadd.f32 %v1658_v45, %v664_v42  ;;  %v663_v41 = vmul.f32 %v1656_v46, %v571_v33  ;;  %v514_v34 = vadd.f32 1e-06, %v489_v52 }
 0x161   :  { %v753_v58 = vadd.f32 %v1658_v45, %v661_v18  ;;  %v757_v11 = vadd.f32 %v1660_v21, %v665_v62  ;;  %v758_v47 = vadd.f32 %v1662_v38, %v666_v9  ;;  %v513_v26 = vadd.f32 1e-06, %v488_v51 }
 0x162   :  { %v754_v0 = vadd.f32 %v1660_v21, %v662_v10  ;;  %v438_v3 = vpop.xlane.xlu1 %437  ;;  %831 = vst [vmem:[#allocation5 + $0x90] sm:$0xff] %v756_v44  ;;  %v755_v6 = vadd.f32 %v1662_v38, %v663_v41  ;;  %v491_v54 = vmul.f32 0.0026041667, %v430_v37  ;;  %v490_v53 = vmul.f32 0.0026041667, %v426_v43 }
 0x163   :  { %828 = vst [vmem:[#allocation5 + $0x78] sm:$0xff] %v753_v58  ;;  %832 = vst [vmem:[#allocation5 + $0x98] sm:$0xff] %v757_v11  ;;  %927 = vrsqrt.f32 %v514_v34  ;;  %v493_v2 = vmul.f32 0.0026041667, %v438_v3  ;;  %v492_v57 = vmul.f32 0.0026041667, %v434_v8 }
 0x164   :  { %833 = vst [vmem:[#allocation5 + $0xa0] sm:$0xff] %v758_v47  ;;  %829 = vst [vmem:[#allocation5 + $0x80] sm:$0xff] %v754_v0  ;;  %v924_v19 = vpop.eup %923  ;;  %929 = vrsqrt.f32 %v513_v26  ;;  %v516_v32 = vadd.f32 1e-06, %v491_v54  ;;  %v515_v16 = vadd.f32 1e-06, %v490_v53 }
 0x165   :  { %830 = vst [vmem:[#allocation5 + $0x88] sm:$0xff] %v755_v6  ;;  %v442_v36 = vpop.xlane.xlu0 %441  ;;  %v575_v17 = vmul.f32 %v924_v19, %v1365_v63  ;;  %v576_v27 = vmul.f32 %v924_v19, %v1368_v14  ;;  %v577_v55 = vmul.f32 %v924_v19, %v1371_v15  ;;  %v518_v37 = vadd.f32 1e-06, %v493_v2 }
 0x166   :  { %931 = vrsqrt.f32 %v516_v32  ;;  %v517_v43 = vadd.f32 1e-06, %v492_v57  ;;  %v494_v42 = vmul.f32 0.0026041667, %v442_v36 }
 0x167   :  { %v446_v40 = vpop.xlane.xlu1 %445  ;;  %v667_v4 = vmul.f32 %v1652_v56, %v575_v17  ;;  %v668_v33 = vmul.f32 %v1654_v12, %v576_v27  ;;  %v669_v18 = vmul.f32 %v1656_v46, %v577_v55  ;;  %933 = vrsqrt.f32 %v515_v16  ;;  %v926_v8 = vpop.eup %925 }
 0x168   :  { %935 = vrsqrt.f32 %v518_v37  ;;  %v495_v62 = vmul.f32 0.0026041667, %v446_v40  ;;  %v519_v63 = vadd.f32 1e-06, %v494_v42  ;;  %v578_v14 = vmul.f32 %v926_v8, %v1384_v5 }
 0x169   :  { %v450_v9 = vpop.xlane.xlu0 %449  ;;  %v579_v15 = vmul.f32 %v926_v8, %v1387_v25  ;;  %v580_v10 = vmul.f32 %v926_v8, %v1404_v28  ;;  %v759_v52 = vadd.f32 %v1658_v45, %v667_v4  ;;  %v760_v44 = vadd.f32 %v1660_v21, %v668_v33  ;;  %v2074_v8 = vld [vmem:[#allocation43_spill] sm:$0xff] }
 0x16a   :  { %v761_v41 = vadd.f32 %v1662_v38, %v669_v18  ;;  %937 = vrsqrt.f32 %v517_v43  ;;  %v520_v58 = vadd.f32 1e-06, %v495_v62  ;;  %v670_v11 = vmul.f32 %v1652_v56, %v578_v14 }
 0x16b   :  { %v454_v51 = vpop.xlane.xlu1 %453  ;;  %v671_v47 = vmul.f32 %v1654_v12, %v579_v15  ;;  %v672_v0 = vmul.f32 %v1656_v46, %v580_v10  ;;  %834 = vst [vmem:[#allocation5 + $0xa8] sm:$0xff] %v759_v52  ;;  %939 = vrsqrt.f32 %v519_v63  ;;  %835 = vst [vmem:[#allocation5 + $0xb0] sm:$0xff] %v760_v44  ;;  %v496_v25 = vmul.f32 0.0026041667, %v450_v9  ;;  %v2075_v15 = vld [vmem:[#allocation44_spill] sm:$0xff] }
 0x16c   :  { %836 = vst [vmem:[#allocation5 + $0xb8] sm:$0xff] %v761_v41  ;;  %941 = vrsqrt.f32 %v520_v58  ;;  %v497_v5 = vmul.f32 0.0026041667, %v454_v51  ;;  %v762_v3 = vadd.f32 %v1658_v45, %v670_v11  ;;  %v2076_v58 = vld [vmem:[#allocation39_spill] sm:$0xff]  ;;  %v2077_v11 = vld [vmem:[#allocation40_spill] sm:$0xff] }
 0x16d   :  { %v458_v28 = vpop.xlane.xlu0 %457  ;;  %v928_v34 = vpop.eup %927  ;;  %v763_v6 = vadd.f32 %v1660_v21, %v671_v47  ;;  %v764_v26 = vadd.f32 %v1662_v38, %v672_v0  ;;  %v1756_v27 = vadd.f32 1e-06, %v496_v25  ;;  %v2078_v25 = vld [vmem:[#allocation41_spill] sm:$0xff] }
 0x16e   :  { %v1748_v54 = vmul.f32 0.0026041667, %v458_v28  ;;  %v930_v53 = vpop.eup %929  ;;  %v584_v2 = vmul.f32 %v928_v34, %v1410_v13  ;;  %v585_v57 = vmul.f32 %v928_v34, %v1413_v39  ;;  %v586_v19 = vmul.f32 %v928_v34, %v1416_v30  ;;  %837 = vst [vmem:[#allocation5 + $0xc0] sm:$0xff] %v762_v3  ;;  %v2079_v34 = vld [vmem:[#allocation48_spill] sm:$0xff] }
 0x16f   :  { %v522_v32 = vadd.f32 1e-06, %v497_v5  ;;  %838 = vst [vmem:[#allocation5 + $0xc8] sm:$0xff] %v763_v6  ;;  %839 = vst [vmem:[#allocation5 + $0xd0] sm:$0xff] %v764_v26  ;;  %v581_v16 = vmul.f32 %v930_v53, %v1390_v22  ;;  %v582_v36 = vmul.f32 %v930_v53, %v1393_v24  ;;  %v583_v17 = vmul.f32 %v930_v53, %v1407_v35  ;;  %v2073_v24 = vld [vmem:[#allocation42_spill] sm:$0xff]  ;;  %v2080_v6 = vld [vmem:[#allocation49_spill] sm:$0xff]  ;;  %v1781_v53 = vpop.xlane.xlu1 %461 }
 0x170   :  { %v932_v55 = vpop.eup %931  ;;  %v676_v37 = vmul.f32 %v1652_v56, %v584_v2  ;;  %v677_v13 = vmul.f32 %v1654_v12, %v585_v57  ;;  %v678_v39 = vmul.f32 %v1656_v46, %v586_v19 }
 0x171   :  { %943 = vrsqrt.f32 %v522_v32  ;;  %v934_v30 = vpop.eup %933  ;;  %v673_v43 = vmul.f32 %v1652_v56, %v581_v16  ;;  %v674_v40 = vmul.f32 %v1654_v12, %v582_v36  ;;  %v675_v22 = vmul.f32 %v1656_v46, %v583_v17 }
 0x172   :  { %v590_v42 = vmul.f32 %v932_v55, %v2073_v24  ;;  %v936_v35 = vpop.eup %935  ;;  %v768_v4 = vadd.f32 %v1658_v45, %v676_v37  ;;  %v769_v33 = vadd.f32 %v1660_v21, %v677_v13  ;;  %v770_v18 = vadd.f32 %v1662_v38, %v678_v39 }
 0x173   :  { %v591_v62 = vmul.f32 %v932_v55, %v2074_v8  ;;  %v765_v63 = vadd.f32 %v1658_v45, %v673_v43  ;;  %v766_v9 = vadd.f32 %v1660_v21, %v674_v40  ;;  %v767_v14 = vadd.f32 %v1662_v38, %v675_v22  ;;  %v2082_v40 = vld [vmem:[#allocation45_spill] sm:$0xff] }
 0x174   :  { %v592_v10 = vmul.f32 %v932_v55, %v2075_v15  ;;  %v938_v52 = vpop.eup %937  ;;  %843 = vst [vmem:[#allocation5 + $0xf0] sm:$0xff] %v768_v4  ;;  %844 = vst [vmem:[#allocation5 + $0xf8] sm:$0xff] %v769_v33  ;;  %v682_v44 = vmul.f32 %v1652_v56, %v590_v42  ;;  %v587_v51 = vmul.f32 %v934_v30, %v2076_v58  ;;  %v2081_v55 = vld [vmem:[#allocation50_spill] sm:$0xff]  ;;  %945 = vrsqrt.f32 %v1756_v27 }
 0x175   :  { %845 = vst [vmem:[#allocation5 + $0x100] sm:$0xff] %v770_v18  ;;  %v683_v41 = vmul.f32 %v1654_v12, %v591_v62  ;;  %v588_v47 = vmul.f32 %v934_v30, %v2077_v11  ;;  %v940_v0 = vpop.eup %939  ;;  %840 = vst [vmem:[#allocation5 + $0xd8] sm:$0xff] %v765_v63  ;;  %v589_v28 = vmul.f32 %v934_v30, %v2078_v25  ;;  %v2084_v62 = vld [vmem:[#allocation47_spill] sm:$0xff]  ;;  %v470_v11 = vpop.xlane.xlu1 %469 }
 0x176   :  { %841 = vst [vmem:[#allocation5 + $0xe0] sm:$0xff] %v766_v9  ;;  %842 = vst [vmem:[#allocation5 + $0xe8] sm:$0xff] %v767_v14  ;;  %v684_v5 = vmul.f32 %v1656_v46, %v592_v10  ;;  %v596_v3 = vmul.f32 %v936_v35, %v2079_v34  ;;  %v597_v26 = vmul.f32 %v936_v35, %v2080_v6  ;;  %v942_v2 = vpop.eup %941  ;;  %v2085_v14 = vld [vmem:[#allocation9_spill] sm:$0xff]  ;;  %v2087_v25 = vld [vmem:[#allocation51_spill] sm:$0xff]  ;;  %v466_v34 = vpop.xlane.xlu0 %465 }
 0x177   :  { %v774_v57 = vadd.f32 %v1658_v45, %v682_v44  ;;  %v775_v19 = vadd.f32 %v1660_v21, %v683_v41  ;;  %v679_v32 = vmul.f32 %v1652_v56, %v587_v51  ;;  %v680_v16 = vmul.f32 %v1654_v12, %v588_v47  ;;  %v2086_v41 = vld [vmem:[#allocation10_spill] sm:$0xff] }
 0x178   :  { %v776_v36 = vadd.f32 %v1662_v38, %v684_v5  ;;  %v681_v17 = vmul.f32 %v1656_v46, %v589_v28  ;;  %v598_v37 = vmul.f32 %v936_v35, %v2081_v55  ;;  %v688_v13 = vmul.f32 %v1652_v56, %v596_v3  ;;  %v2083_v35 = vld [vmem:[#allocation46_spill] sm:$0xff] }
 0x179   :  { %849 = vst [vmem:[#allocation5 + $0x120] sm:$0xff] %v774_v57  ;;  %850 = vst [vmem:[#allocation5 + $0x128] sm:$0xff] %v775_v19  ;;  %v771_v39 = vadd.f32 %v1658_v45, %v679_v32  ;;  %v772_v30 = vadd.f32 %v1660_v21, %v680_v16  ;;  %v689_v43 = vmul.f32 %v1654_v12, %v597_v26  ;;  %v2088_v57 = vld [vmem:[#allocation8_spill] sm:$0xff]  ;;  %v2089_v32 = vld [vmem:[#allocation11_spill] sm:$0xff] }
 0x17a   :  { %v593_v22 = vmul.f32 %v938_v52, %v2082_v40  ;;  %851 = vst [vmem:[#allocation5 + $0x130] sm:$0xff] %v776_v36  ;;  %v773_v24 = vadd.f32 %v1662_v38, %v681_v17  ;;  %v690_v42 = vmul.f32 %v1656_v46, %v598_v37  ;;  %v780_v4 = vadd.f32 %v1658_v45, %v688_v13 }
 0x17b   :  { %v594_v33 = vmul.f32 %v938_v52, %v2083_v35  ;;  %v944_v18 = vpop.eup %943  ;;  %846 = vst [vmem:[#allocation5 + $0x108] sm:$0xff] %v771_v39  ;;  %847 = vst [vmem:[#allocation5 + $0x110] sm:$0xff] %v772_v30  ;;  %v781_v8 = vadd.f32 %v1660_v21, %v689_v43  ;;  %v595_v63 = vmul.f32 %v938_v52, %v2084_v62  ;;  %v474_v35 = vpop.xlane.xlu0 %473  ;;  %v500_v62 = vmul.f32 0.0026041667, %v466_v34 }
 0x17c   :  { %v685_v9 = vmul.f32 %v1652_v56, %v593_v22  ;;  %v602_v15 = vmul.f32 %v942_v2, %v2085_v14  ;;  %848 = vst [vmem:[#allocation5 + $0x118] sm:$0xff] %v773_v24  ;;  %v782_v10 = vadd.f32 %v1662_v38, %v690_v42  ;;  %855 = vst [vmem:[#allocation5 + $0x150] sm:$0xff] %v780_v4  ;;  %v478_v24 = vpop.xlane.xlu1 %477 }
 0x17d   :  { %v686_v44 = vmul.f32 %v1654_v12, %v594_v33  ;;  %v603_v58 = vmul.f32 %v942_v2, %v2086_v41  ;;  %v604_v51 = vmul.f32 %v942_v2, %v1500_v48  ;;  %856 = vst [vmem:[#allocation5 + $0x158] sm:$0xff] %v781_v8  ;;  %v687_v47 = vmul.f32 %v1656_v46, %v595_v63  ;;  %v2090_v41 = vld [vmem:[#allocation14_spill] sm:$0xff] }
 0x17e   :  { %v777_v52 = vadd.f32 %v1658_v45, %v685_v9  ;;  %v694_v5 = vmul.f32 %v1652_v56, %v602_v15  ;;  %v599_v28 = vmul.f32 %v940_v0, %v2087_v25  ;;  %857 = vst [vmem:[#allocation5 + $0x160] sm:$0xff] %v782_v10  ;;  %v600_v48 = vmul.f32 %v940_v0, %v2088_v57 }
 0x17f   :  { %v778_v3 = vadd.f32 %v1660_v21, %v686_v44  ;;  %v695_v6 = vmul.f32 %v1654_v12, %v603_v58  ;;  %v696_v26 = vmul.f32 %v1656_v46, %v604_v51  ;;  %v779_v2 = vadd.f32 %v1662_v38, %v687_v47  ;;  %v946_v44 = vpop.eup %945  ;;  %v2091_v51 = vld [vmem:[#allocation12_spill] sm:$0xff]  ;;  %v2092_v47 = vld [vmem:[#allocation13_spill] sm:$0xff] }
 0x180   :  { %852 = vst [vmem:[#allocation5 + $0x138] sm:$0xff] %v777_v52  ;;  %v786_v19 = vadd.f32 %v1658_v45, %v694_v5  ;;  %v601_v16 = vmul.f32 %v940_v0, %v2089_v32  ;;  %v691_v36 = vmul.f32 %v1652_v56, %v599_v28  ;;  %v692_v37 = vmul.f32 %v1654_v12, %v600_v48 }
 0x181   :  { %853 = vst [vmem:[#allocation5 + $0x140] sm:$0xff] %v778_v3  ;;  %v787_v17 = vadd.f32 %v1660_v21, %v695_v6  ;;  %v788_v55 = vadd.f32 %v1662_v38, %v696_v26  ;;  %v608_v13 = vmul.f32 %v944_v18, %v1520_v60  ;;  %854 = vst [vmem:[#allocation5 + $0x148] sm:$0xff] %v779_v2  ;;  %v499_v60 = vmul.f32 0.0026041667, %v1781_v53  ;;  %v2093_v6 = vld [vmem:[#allocation17_spill] sm:$0xff] }
 0x182   :  { %861 = vst [vmem:[#allocation5 + $0x180] sm:$0xff] %v786_v19  ;;  %v693_v39 = vmul.f32 %v1656_v46, %v601_v16  ;;  %v783_v30 = vadd.f32 %v1658_v45, %v691_v36  ;;  %v609_v43 = vmul.f32 %v944_v18, %v1523_v23  ;;  %v610_v0 = vmul.f32 %v944_v18, %v1526_v7 }
 0x183   :  { %862 = vst [vmem:[#allocation5 + $0x188] sm:$0xff] %v787_v17  ;;  %863 = vst [vmem:[#allocation5 + $0x190] sm:$0xff] %v788_v55  ;;  %v784_v40 = vadd.f32 %v1660_v21, %v692_v37  ;;  %v700_v22 = vmul.f32 %v1652_v56, %v608_v13  ;;  %v523_v7 = vadd.f32 1e-06, %v1748_v54  ;;  %v524_v18 = vadd.f32 1e-06, %v499_v60 }
 0x184   :  { %v785_v42 = vadd.f32 %v1662_v38, %v693_v39  ;;  %858 = vst [vmem:[#allocation5 + $0x168] sm:$0xff] %v783_v30  ;;  %v701_v4 = vmul.f32 %v1654_v12, %v609_v43  ;;  %v702_v23 = vmul.f32 %v1656_v46, %v610_v0  ;;  %v501_v8 = vmul.f32 0.0026041667, %v470_v11 }
 0x185   :  { %859 = vst [vmem:[#allocation5 + $0x170] sm:$0xff] %v784_v40  ;;  %v792_v33 = vadd.f32 %v1658_v45, %v700_v22  ;;  %947 = vrsqrt.f32 %v523_v7  ;;  %v503_v63 = vmul.f32 0.0026041667, %v478_v24  ;;  %v525_v14 = vadd.f32 1e-06, %v500_v62  ;;  %v2096_v62 = vld [vmem:[#allocation20_spill] sm:$0xff] }
 0x186   :  { %860 = vst [vmem:[#allocation5 + $0x178] sm:$0xff] %v785_v42  ;;  %v793_v27 = vadd.f32 %v1660_v21, %v701_v4  ;;  %v794_v53 = vadd.f32 %v1662_v38, %v702_v23  ;;  %949 = vrsqrt.f32 %v524_v18  ;;  %v526_v9 = vadd.f32 1e-06, %v501_v8  ;;  %v2094_v23 = vld [vmem:[#allocation15_spill] sm:$0xff] }
 0x187   :  { %867 = vst [vmem:[#allocation5 + $0x1b0] sm:$0xff] %v792_v33  ;;  %v502_v15 = vmul.f32 0.0026041667, %v474_v35  ;;  %v528_v54 = vadd.f32 1e-06, %v503_v63  ;;  %v605_v58 = vmul.f32 %v946_v44, %v2090_v41  ;;  %v606_v11 = vmul.f32 %v946_v44, %v2091_v51 }
 0x188   :  { %868 = vst [vmem:[#allocation5 + $0x1b8] sm:$0xff] %v793_v27  ;;  %869 = vst [vmem:[#allocation5 + $0x1c0] sm:$0xff] %v794_v53  ;;  %951 = vrsqrt.f32 %v526_v9  ;;  %v607_v52 = vmul.f32 %v946_v44, %v2092_v47  ;;  %v2097_v9 = vld [vmem:[#allocation21_spill] sm:$0xff] }
 0x189   :  { %953 = vrsqrt.f32 %v525_v14  ;;  %v527_v10 = vadd.f32 1e-06, %v502_v15  ;;  %v697_v25 = vmul.f32 %v1652_v56, %v605_v58  ;;  %v698_v28 = vmul.f32 %v1654_v12, %v606_v11  ;;  %v2098_v15 = vld [vmem:[#allocation22_spill] sm:$0xff]  ;;  %v2099_v58 = vld [vmem:[#allocation24_spill] sm:$0xff] }
 0x18a   :  { %955 = vrsqrt.f32 %v528_v54  ;;  %v699_v34 = vmul.f32 %v1656_v46, %v607_v52 }
 0x18b   :  { %957 = vrsqrt.f32 %v527_v10  ;;  %v789_v2 = vadd.f32 %v1658_v45, %v697_v25  ;;  %v790_v19 = vadd.f32 %v1660_v21, %v698_v28 }
 0x18c   :  { %v791_v32 = vadd.f32 %v1662_v38, %v699_v34 }
 0x18d   :  { %864 = vst [vmem:[#allocation5 + $0x198] sm:$0xff] %v789_v2  ;;  %865 = vst [vmem:[#allocation5 + $0x1a0] sm:$0xff] %v790_v19  ;;  %v2102_v2 = vld [vmem:[#allocation23_spill] sm:$0xff] }
 0x18e   :  { %866 = vst [vmem:[#allocation5 + $0x1a8] sm:$0xff] %v791_v32 }
 0x18f   :  { %v948_v5 = vpop.eup %947 }
 0x190   :  { %v950_v3 = vpop.eup %949  ;;  %v611_v26 = vmul.f32 %v948_v5, %v2093_v6  ;;  %v612_v57 = vmul.f32 %v948_v5, %v1534_v31  ;;  %v613_v48 = vmul.f32 %v948_v5, %v1543_v61  ;;  %v2100_v5 = vld [vmem:[#allocation18_spill] sm:$0xff]  ;;  %v2101_v6 = vld [vmem:[#allocation19_spill] sm:$0xff] }
 0x191   :  { %v614_v16 = vmul.f32 %v950_v3, %v1546_v1  ;;  %v615_v17 = vmul.f32 %v950_v3, %v1553_v59  ;;  %v616_v55 = vmul.f32 %v950_v3, %v1556_v50 }
 0x192   :  { %v952_v36 = vpop.eup %951  ;;  %v703_v37 = vmul.f32 %v1652_v56, %v611_v26  ;;  %v704_v13 = vmul.f32 %v1654_v12, %v612_v57  ;;  %v705_v39 = vmul.f32 %v1656_v46, %v613_v48 }
 0x193   :  { %v954_v31 = vpop.eup %953  ;;  %v706_v61 = vmul.f32 %v1652_v56, %v614_v16  ;;  %v620_v30 = vmul.f32 %v952_v36, %v1578_v20  ;;  %v621_v1 = vmul.f32 %v952_v36, %v1581_v29  ;;  %v707_v59 = vmul.f32 %v1654_v12, %v615_v17 }
 0x194   :  { %v708_v50 = vmul.f32 %v1656_v46, %v616_v55  ;;  %v795_v43 = vadd.f32 %v1658_v45, %v703_v37  ;;  %v796_v0 = vadd.f32 %v1660_v21, %v704_v13  ;;  %v956_v40 = vpop.eup %955  ;;  %v797_v60 = vadd.f32 %v1662_v38, %v705_v39 }
 0x195   :  { %v798_v22 = vadd.f32 %v1658_v45, %v706_v61  ;;  %v622_v24 = vmul.f32 %v952_v36, %v1584_v49  ;;  %v712_v42 = vmul.f32 %v1652_v56, %v620_v30  ;;  %v799_v20 = vadd.f32 %v1660_v21, %v707_v59  ;;  %v958_v35 = vpop.eup %957  ;;  %v2095_v49 = vld [vmem:[#allocation16_spill] sm:$0xff] }
 0x196   :  { %v800_v29 = vadd.f32 %v1662_v38, %v708_v50  ;;  %870 = vst [vmem:[#allocation5 + $0x1c8] sm:$0xff] %v795_v43  ;;  %871 = vst [vmem:[#allocation5 + $0x1d0] sm:$0xff] %v796_v0  ;;  %v713_v4 = vmul.f32 %v1654_v12, %v621_v1  ;;  %v617_v7 = vmul.f32 %v954_v31, %v2094_v23 }
 0x197   :  { %873 = vst [vmem:[#allocation5 + $0x1e0] sm:$0xff] %v798_v22  ;;  %872 = vst [vmem:[#allocation5 + $0x1d8] sm:$0xff] %v797_v60  ;;  %v714_v33 = vmul.f32 %v1656_v46, %v622_v24  ;;  %v804_v18 = vadd.f32 %v1658_v45, %v712_v42  ;;  %v618_v8 = vmul.f32 %v954_v31, %v2095_v49 }
 0x198   :  { %v619_v27 = vmul.f32 %v954_v31, %v2096_v62  ;;  %874 = vst [vmem:[#allocation5 + $0x1e8] sm:$0xff] %v799_v20  ;;  %875 = vst [vmem:[#allocation5 + $0x1f0] sm:$0xff] %v800_v29  ;;  %v805_v53 = vadd.f32 %v1660_v21, %v713_v4  ;;  %v709_v63 = vmul.f32 %v1652_v56, %v617_v7 }
 0x199   :  { %v626_v14 = vmul.f32 %v956_v40, %v2097_v9  ;;  %v627_v54 = vmul.f32 %v956_v40, %v2098_v15  ;;  %v806_v10 = vadd.f32 %v1662_v38, %v714_v33  ;;  %879 = vst [vmem:[#allocation5 + $0x210] sm:$0xff] %v804_v18  ;;  %v710_v44 = vmul.f32 %v1654_v12, %v618_v8 }
 0x19a   :  { %v711_v41 = vmul.f32 %v1656_v46, %v619_v27  ;;  %v628_v51 = vmul.f32 %v956_v40, %v2099_v58  ;;  %880 = vst [vmem:[#allocation5 + $0x218] sm:$0xff] %v805_v53  ;;  %v801_v11 = vadd.f32 %v1658_v45, %v709_v63  ;;  %v623_v25 = vmul.f32 %v958_v35, %v2100_v5 }
 0x19b   :  { %v718_v47 = vmul.f32 %v1652_v56, %v626_v14  ;;  %v719_v52 = vmul.f32 %v1654_v12, %v627_v54  ;;  %881 = vst [vmem:[#allocation5 + $0x220] sm:$0xff] %v806_v10  ;;  %v802_v28 = vadd.f32 %v1660_v21, %v710_v44  ;;  %v624_v26 = vmul.f32 %v958_v35, %v2101_v6 }
 0x19c   :  { %v803_v34 = vadd.f32 %v1662_v38, %v711_v41  ;;  %v720_v3 = vmul.f32 %v1656_v46, %v628_v51  ;;  %876 = vst [vmem:[#allocation5 + $0x1f8] sm:$0xff] %v801_v11  ;;  %v625_v19 = vmul.f32 %v958_v35, %v2102_v2  ;;  %v715_v32 = vmul.f32 %v1652_v56, %v623_v25 }
 0x19d   :  { %v810_v57 = vadd.f32 %v1658_v45, %v718_v47  ;;  %v811_v48 = vadd.f32 %v1660_v21, %v719_v52  ;;  %877 = vst [vmem:[#allocation5 + $0x200] sm:$0xff] %v802_v28  ;;  %v716_v36 = vmul.f32 %v1654_v12, %v624_v26 }
 0x19e   :  { %878 = vst [vmem:[#allocation5 + $0x208] sm:$0xff] %v803_v34  ;;  %v812_v16 = vadd.f32 %v1662_v38, %v720_v3  ;;  %v717_v17 = vmul.f32 %v1656_v46, %v625_v19  ;;  %v807_v55 = vadd.f32 %v1658_v45, %v715_v32 }
 0x19f   :  { %885 = vst [vmem:[#allocation5 + $0x240] sm:$0xff] %v810_v57  ;;  %886 = vst [vmem:[#allocation5 + $0x248] sm:$0xff] %v811_v48  ;;  %v808_v37 = vadd.f32 %v1660_v21, %v716_v36 }
 0x1a0   :  { %887 = vst [vmem:[#allocation5 + $0x250] sm:$0xff] %v812_v16  ;;  %v809_v13 = vadd.f32 %v1662_v38, %v717_v17  ;;  %882 = vst [vmem:[#allocation5 + $0x228] sm:$0xff] %v807_v55 }
 0x1a1   :  { %883 = vst [vmem:[#allocation5 + $0x230] sm:$0xff] %v808_v37 }
 0x1a2   :  { %884 = vst [vmem:[#allocation5 + $0x238] sm:$0xff] %v809_v13 }
 0x1a3   :  { %992 = shalt.err (!%p989_p12)
}
 0x1a4   :  { %s993_s5 = scalar_lea.hbm %s1919_s3, 9600 }
 0x1a5   :  { %p994_p13 = scmp.ne.s32.totalorder %s1919_s3, %s993_s5  ;;  %p997_p0 = scmp.lt.u32.totalorder %s993_s5, %s1919_s3 }
 0x1a7   :  { %p999_p1 = pnand %p997_p0, %p994_p13 }
 0x1a9   :  { %1002 = shalt.err (!%p999_p1)
}
 0x1aa   :  { %899 = dma.vmem_to_hbm [thread:$0]  %s894_s2, 9600, %s1919_s3, [#allocation4], %s1008_s22, %s1008_s22, %s1009_s23  }
 0x1ab   :  { %1005 = dma.done.wait [#allocation4], 9600  }
 0x1ac   :  { %1006 = vsyncadd [#allocation4], 4294957696 }
 0x1ad   :  { %903 = vsyncpa [#allocation3], 1 }
 0x1ae   :  { %904 = vsyncpa [#allocation4], 1 }

</bundles_post_ra>
